<compile_context>
chip_gen: v7x
topology: tpu7x:2x2x1
jax: 0.10.0
libtpu: 0.0.40
codegen_flags: <defaults>
</compile_context>

<pallas_src>
import jax
import jax.numpy as jnp
import numpy as np
from jax.experimental import pallas as pl
from jax.experimental.pallas import tpu as pltpu


def _make_conv_kernel(KH, KW, dh, dw, Wp, TL, has_bias):
    """Build the per-(image, lane-tile) kernel."""

    def kernel(xw_ref, w_ref, *rest):
        # xw_ref: (1, 1, C, TLin) bf16 input window (tile + halo)
        # w_ref : (KH*KW, O, C)   bf16 per-tap weight matrices
        # b_ref : (O, 1)          f32 bias (only when has_bias)
        # o_ref : (1, O, TL)      lane-dense output tile (TL % 128 == 0)
        if has_bias:
            b_ref, o_ref = rest
        else:
            (o_ref,) = rest

        xw = xw_ref[0, 0]                                   # (C, TLin) bf16
        acc = None
        # Short, fully unrolled tap loop: KH*KW shifted (O,C)x(C,TL) MXU
        # matmuls accumulated in f32 registers.  (With small C the MXU depth
        # is under-used -- inherent for C=4/O=8; for large C one would fold
        # the full C*KH*KW contraction into a single matmul instead.)
        for kh in range(KH):
            for kw in range(KW):
                shift = kh * dh * Wp + kw * dw              # static lane offset
                tap = xw[:, shift:shift + TL]               # (C, TL), static slice
                part = jnp.dot(w_ref[kh * KW + kw], tap,
                               preferred_element_type=jnp.float32)
                acc = part if acc is None else acc + part
        if has_bias:
            acc = acc + b_ref[...]                          # f32 epilogue (v5e-safe)
        o_ref[0] = acc.astype(o_ref.dtype)

    return kernel


def _pick_lane_tile(l_goal, max_tile_lanes=2048):
    """Largest multiple-of-128 lane tile <= max_tile_lanes that still leaves
    >= 2 tiles per image when possible (pipelining + work for both v7x TCs)."""
    tl = 128
    while tl * 2 <= max_tile_lanes and pl.cdiv(l_goal, tl * 2) >= 2:
        tl *= 2
    return tl


def mp_conv2d_forward(x, weight, bias, stride=(1, 1), padding=(1, 1),
                      dilation=(1, 1), compute_dtype=jnp.bfloat16,
                      max_tile_lanes=2048):
    """Replicates MPConv2d.forward (train/test identical: quantize_weights=False).

    NOTE on padding order: MPConv2d builds the F.pad tuple as
    2*(padding[0],) + 2*(padding[1],), so the LAST dim (W) is padded with
    padding[0] and H with padding[1].  This intentionally diverges from the
    usual conv convention whenever padding[0] != padding[1]; we replicate it
    exactly.  The conv itself then runs with padding=(0, 0).
    """
    N, C, H, W = x.shape
    O, Cw, KH, KW = weight.shape
    assert C == Cw  # TODO(synk): groups > 1 not implemented (module default groups=1)
    sh, sw = stride
    dh, dw = dilation
    # TODO(synk): stride > 1 would need lane-strided tap slices (or an im2col
    # fallback); the module config under test uses stride=1.
    assert sh == 1 and sw == 1, "Pallas fast path implemented for stride=(1, 1)"

    pw, ph = padding[0], padding[1]          # W gets padding[0], H gets padding[1]
    xp = jnp.pad(x, ((0, 0), (0, 0), (ph, ph), (pw, pw)))
    Hp, Wp = H + 2 * ph, W + 2 * pw
    Ho = (Hp - dh * (KH - 1) - 1) // sh + 1
    Wo = (Wp - dw * (KW - 1) - 1) // sw + 1

    # Pitched output length and lane tiling.
    max_shift = (KH - 1) * dh * Wp + (KW - 1) * dw
    TL = _pick_lane_tile(Ho * Wp, max_tile_lanes)
    nT = pl.cdiv(Ho * Wp, TL)
    Lout = nT * TL                            # multiple of 128 -> lane-dense stores
    TLin = TL + max_shift                     # tile + halo

    # Flatten the padded image (cheap XLA reshape, bf16 halves HBM bytes) and
    # zero-pad the tail so every tile's halo read stays in bounds.
    xflat = xp.astype(compute_dtype).reshape(N, C, Hp * Wp)
    xflat = jnp.pad(xflat, ((0, 0), (0, 0), (0, Lout + max_shift - Hp * Wp)))

    # Overlapping per-tile input windows.  Only the inter-tile halo is
    # duplicated (a few % at realistic sizes) vs. the 9x blow-up of a full
    # im2col; the kernel then reads each input byte once from HBM.
    windows = jnp.stack(
        [xflat[:, :, t * TL: t * TL + TLin] for t in range(nT)], axis=1
    )                                          # (N, nT, C, TLin)

    # Per-tap (O, C) weight matrices in bf16 (f32 accumulation in-kernel).
    w_taps = weight.astype(compute_dtype).transpose(2, 3, 0, 1).reshape(KH * KW, O, C)

    has_bias = bias is not None
    inputs = [windows, w_taps]
    in_specs = [
        pl.BlockSpec((1, 1, C, TLin), lambda n, t: (n, t, 0, 0)),
        pl.BlockSpec((KH * KW, O, C), lambda n, t: (0, 0, 0)),   # resident weights
    ]
    if has_bias:
        inputs.append(bias.astype(jnp.float32).reshape(O, 1))
        in_specs.append(pl.BlockSpec((O, 1), lambda n, t: (0, 0)))

    flops = 2 * N * nT * KH * KW * O * C * TL
    bytes_accessed = (N * nT * C * TLin * windows.dtype.itemsize
                      + KH * KW * O * C * w_taps.dtype.itemsize
                      + (O * 4 if has_bias else 0)
                      + N * O * Lout * x.dtype.itemsize)

    out_flat = pl.pallas_call(
        _make_conv_kernel(KH, KW, dh, dw, Wp, TL, has_bias),
        out_shape=jax.ShapeDtypeStruct((N, O, Lout), x.dtype),
        grid_spec=pltpu.PrefetchScalarGridSpec(
            num_scalar_prefetch=0,
            grid=(N, nT),
            in_specs=in_specs,
            out_specs=pl.BlockSpec((1, O, TL), lambda n, t: (n, 0, t)),
        ),
        compiler_params=pltpu.CompilerParams(
            # Two independent axes: images and lane tiles (megacore / 2 TCs).
            dimension_semantics=("parallel", "parallel"),
            # Tiles are sized well below this; explicit so larger configs do
            # not silently hit the default scoped limit (v7x VMEM is 64 MiB).
            vmem_limit_bytes=32 * 1024 * 1024),
        cost_estimate=pl.CostEstimate(flops=flops, transcendentals=0,
                                      bytes_accessed=bytes_accessed),
    )(*inputs)

    # Drop the per-row gutter (Wp - Wo columns) and tail padding.
    out = out_flat[:, :, :Ho * Wp].reshape(N, O, Ho, Wp)[:, :, :, :Wo]
    return out


if __name__ == "__main__":
    # Module config: MPConv2d(quantize_weights=False, in_channels=4,
    # out_channels=8, kernel_size=3, stride=1, padding=1, bias=True)
    N, C, H, W = 2, 4, 16, 16
    O, KH, KW = 8, 3, 3
    stride, padding, dilation = (1, 1), (1, 1), (1, 1)

    key = jax.random.PRNGKey(0)
    kx, kw_key = jax.random.split(key)
    x = jax.random.normal(kx, (N, C, H, W), dtype=jnp.float32)

    # Deterministic init in the spirit of keras_replica (glorot-uniform weight,
    # bias = 0 per init.constant_(self.bias, 0.0)).
    fan_in = C * KH * KW
    fan_out = O * KH * KW
    limit = float(np.sqrt(6.0 / (fan_in + fan_out)))
    weight = jax.random.uniform(kw_key, (O, C, KH, KW), dtype=jnp.float32,
                                minval=-limit, maxval=limit)
    bias = jnp.zeros((O,), dtype=jnp.float32)

    out = mp_conv2d_forward(x, weight, bias, stride, padding, dilation)
    out = jax.block_until_ready(out)

    # Reference: identical explicit-pad-then-VALID conv, using the same bf16
    # operand quantization and f32 accumulation as the kernel.
    x_bf = x.astype(jnp.bfloat16)
    w_bf = weight.astype(jnp.bfloat16)
    xp_ref = jnp.pad(x_bf, ((0, 0), (0, 0),
                            (padding[1], padding[1]), (padding[0], padding[0])))
    ref = jax.lax.conv_general_dilated(
        xp_ref, w_bf, window_strides=stride, padding="VALID",
        rhs_dilation=dilation,
        dimension_numbers=("NCHW", "OIHW", "NCHW"),
        preferred_element_type=jnp.float32) + bias[None, :, None, None]
    np.testing.assert_allclose(np.asarray(out), np.asarray(ref),
                               rtol=1e-3, atol=1e-3)

    print("KERNEL_OK")
</pallas_src>

<mosaic_0001>
module attributes {stable_mosaic.version = 11 : i64} {
  func.func @kernel(%arg0: i32, %arg1: i32, %arg2: memref<1x1x4x294xbf16, #tpu.memory_space<vmem>>, %arg3: memref<9x8x4xbf16, #tpu.memory_space<vmem>>, %arg4: memref<8x1xf32, #tpu.memory_space<vmem>>, %arg5: memref<1x8x256xf32, #tpu.memory_space<vmem>>) attributes {dimension_semantics = [#tpu.dimension_semantics<parallel>, #tpu.dimension_semantics<parallel>], iteration_bounds = array<i64: 2, 2>, scalar_prefetch = 0 : i64, scratch_operands = 0 : i64, tpu.core_type = #tpu.core_type<tc>, window_params = [{transform_indices = @transform_0, window_bounds = array<i64: 1, 1, 4, 294>}, {pipeline_mode = #tpu.pipeline_mode<synchronous>, transform_indices = @transform_1, window_bounds = array<i64: 9, 8, 4>}, {pipeline_mode = #tpu.pipeline_mode<synchronous>, transform_indices = @transform_2, window_bounds = array<i64: 8, 1>}, {transform_indices = @transform_3, window_bounds = array<i64: 1, 8, 256>}]} {
    %c0 = arith.constant 0 : index
    %c0_0 = arith.constant 0 : index
    %c0_1 = arith.constant 0 : index
    %c0_2 = arith.constant 0 : index
    %0 = vector.load %arg2[%c0, %c0_0, %c0_1, %c0_2] : memref<1x1x4x294xbf16, #tpu.memory_space<vmem>>, vector<1x1x4x294xbf16>
    %1 = vector.shape_cast %0 : vector<1x1x4x294xbf16> to vector<4x294xbf16>
    %2 = vector.extract_strided_slice %1 {offsets = [0, 0], sizes = [4, 256], strides = [1, 1]} : vector<4x294xbf16> to vector<4x256xbf16>
    %c0_3 = arith.constant 0 : index
    %c0_4 = arith.constant 0 : index
    %c0_5 = arith.constant 0 : index
    %3 = vector.load %arg3[%c0_3, %c0_4, %c0_5] : memref<9x8x4xbf16, #tpu.memory_space<vmem>>, vector<1x8x4xbf16>
    %4 = vector.shape_cast %3 : vector<1x8x4xbf16> to vector<8x4xbf16>
    %cst = arith.constant dense<0.000000e+00> : vector<8x256xf32>
    %5 = tpu.matmul %4, %2, %cst {dimension_numbers = #tpu.dot_dimension_numbers<[1], [0], [0], [1], [0, 0, 1, 1], [], []>} : vector<8x4xbf16>, vector<4x256xbf16>, vector<8x256xf32> -> vector<8x256xf32>
    %6 = vector.extract_strided_slice %1 {offsets = [0, 1], sizes = [4, 256], strides = [1, 1]} : vector<4x294xbf16> to vector<4x256xbf16>
    %c1 = arith.constant 1 : index
    %c0_6 = arith.constant 0 : index
    %c0_7 = arith.constant 0 : index
    %7 = vector.load %arg3[%c1, %c0_6, %c0_7] : memref<9x8x4xbf16, #tpu.memory_space<vmem>>, vector<1x8x4xbf16>
    %8 = vector.shape_cast %7 : vector<1x8x4xbf16> to vector<8x4xbf16>
    %cst_8 = arith.constant dense<0.000000e+00> : vector<8x256xf32>
    %9 = tpu.matmul %8, %6, %cst_8 {dimension_numbers = #tpu.dot_dimension_numbers<[1], [0], [0], [1], [0, 0, 1, 1], [], []>} : vector<8x4xbf16>, vector<4x256xbf16>, vector<8x256xf32> -> vector<8x256xf32>
    %10 = arith.addf %5, %9 : vector<8x256xf32>
    %11 = vector.extract_strided_slice %1 {offsets = [0, 2], sizes = [4, 256], strides = [1, 1]} : vector<4x294xbf16> to vector<4x256xbf16>
    %c2 = arith.constant 2 : index
    %c0_9 = arith.constant 0 : index
    %c0_10 = arith.constant 0 : index
    %12 = vector.load %arg3[%c2, %c0_9, %c0_10] : memref<9x8x4xbf16, #tpu.memory_space<vmem>>, vector<1x8x4xbf16>
    %13 = vector.shape_cast %12 : vector<1x8x4xbf16> to vector<8x4xbf16>
    %cst_11 = arith.constant dense<0.000000e+00> : vector<8x256xf32>
    %14 = tpu.matmul %13, %11, %cst_11 {dimension_numbers = #tpu.dot_dimension_numbers<[1], [0], [0], [1], [0, 0, 1, 1], [], []>} : vector<8x4xbf16>, vector<4x256xbf16>, vector<8x256xf32> -> vector<8x256xf32>
    %15 = arith.addf %10, %14 : vector<8x256xf32>
    %16 = vector.extract_strided_slice %1 {offsets = [0, 18], sizes = [4, 256], strides = [1, 1]} : vector<4x294xbf16> to vector<4x256xbf16>
    %c3 = arith.constant 3 : index
    %c0_12 = arith.constant 0 : index
    %c0_13 = arith.constant 0 : index
    %17 = vector.load %arg3[%c3, %c0_12, %c0_13] : memref<9x8x4xbf16, #tpu.memory_space<vmem>>, vector<1x8x4xbf16>
    %18 = vector.shape_cast %17 : vector<1x8x4xbf16> to vector<8x4xbf16>
    %cst_14 = arith.constant dense<0.000000e+00> : vector<8x256xf32>
    %19 = tpu.matmul %18, %16, %cst_14 {dimension_numbers = #tpu.dot_dimension_numbers<[1], [0], [0], [1], [0, 0, 1, 1], [], []>} : vector<8x4xbf16>, vector<4x256xbf16>, vector<8x256xf32> -> vector<8x256xf32>
    %20 = arith.addf %15, %19 : vector<8x256xf32>
    %21 = vector.extract_strided_slice %1 {offsets = [0, 19], sizes = [4, 256], strides = [1, 1]} : vector<4x294xbf16> to vector<4x256xbf16>
    %c4 = arith.constant 4 : index
    %c0_15 = arith.constant 0 : index
    %c0_16 = arith.constant 0 : index
    %22 = vector.load %arg3[%c4, %c0_15, %c0_16] : memref<9x8x4xbf16, #tpu.memory_space<vmem>>, vector<1x8x4xbf16>
    %23 = vector.shape_cast %22 : vector<1x8x4xbf16> to vector<8x4xbf16>
    %cst_17 = arith.constant dense<0.000000e+00> : vector<8x256xf32>
    %24 = tpu.matmul %23, %21, %cst_17 {dimension_numbers = #tpu.dot_dimension_numbers<[1], [0], [0], [1], [0, 0, 1, 1], [], []>} : vector<8x4xbf16>, vector<4x256xbf16>, vector<8x256xf32> -> vector<8x256xf32>
    %25 = arith.addf %20, %24 : vector<8x256xf32>
    %26 = vector.extract_strided_slice %1 {offsets = [0, 20], sizes = [4, 256], strides = [1, 1]} : vector<4x294xbf16> to vector<4x256xbf16>
    %c5 = arith.constant 5 : index
    %c0_18 = arith.constant 0 : index
    %c0_19 = arith.constant 0 : index
    %27 = vector.load %arg3[%c5, %c0_18, %c0_19] : memref<9x8x4xbf16, #tpu.memory_space<vmem>>, vector<1x8x4xbf16>
    %28 = vector.shape_cast %27 : vector<1x8x4xbf16> to vector<8x4xbf16>
    %cst_20 = arith.constant dense<0.000000e+00> : vector<8x256xf32>
    %29 = tpu.matmul %28, %26, %cst_20 {dimension_numbers = #tpu.dot_dimension_numbers<[1], [0], [0], [1], [0, 0, 1, 1], [], []>} : vector<8x4xbf16>, vector<4x256xbf16>, vector<8x256xf32> -> vector<8x256xf32>
    %30 = arith.addf %25, %29 : vector<8x256xf32>
    %31 = vector.extract_strided_slice %1 {offsets = [0, 36], sizes = [4, 256], strides = [1, 1]} : vector<4x294xbf16> to vector<4x256xbf16>
    %c6 = arith.constant 6 : index
    %c0_21 = arith.constant 0 : index
    %c0_22 = arith.constant 0 : index
    %32 = vector.load %arg3[%c6, %c0_21, %c0_22] : memref<9x8x4xbf16, #tpu.memory_space<vmem>>, vector<1x8x4xbf16>
    %33 = vector.shape_cast %32 : vector<1x8x4xbf16> to vector<8x4xbf16>
    %cst_23 = arith.constant dense<0.000000e+00> : vector<8x256xf32>
    %34 = tpu.matmul %33, %31, %cst_23 {dimension_numbers = #tpu.dot_dimension_numbers<[1], [0], [0], [1], [0, 0, 1, 1], [], []>} : vector<8x4xbf16>, vector<4x256xbf16>, vector<8x256xf32> -> vector<8x256xf32>
    %35 = arith.addf %30, %34 : vector<8x256xf32>
    %36 = vector.extract_strided_slice %1 {offsets = [0, 37], sizes = [4, 256], strides = [1, 1]} : vector<4x294xbf16> to vector<4x256xbf16>
    %c7 = arith.constant 7 : index
    %c0_24 = arith.constant 0 : index
    %c0_25 = arith.constant 0 : index
    %37 = vector.load %arg3[%c7, %c0_24, %c0_25] : memref<9x8x4xbf16, #tpu.memory_space<vmem>>, vector<1x8x4xbf16>
    %38 = vector.shape_cast %37 : vector<1x8x4xbf16> to vector<8x4xbf16>
    %cst_26 = arith.constant dense<0.000000e+00> : vector<8x256xf32>
    %39 = tpu.matmul %38, %36, %cst_26 {dimension_numbers = #tpu.dot_dimension_numbers<[1], [0], [0], [1], [0, 0, 1, 1], [], []>} : vector<8x4xbf16>, vector<4x256xbf16>, vector<8x256xf32> -> vector<8x256xf32>
    %40 = arith.addf %35, %39 : vector<8x256xf32>
    %41 = vector.extract_strided_slice %1 {offsets = [0, 38], sizes = [4, 256], strides = [1, 1]} : vector<4x294xbf16> to vector<4x256xbf16>
    %c8 = arith.constant 8 : index
    %c0_27 = arith.constant 0 : index
    %c0_28 = arith.constant 0 : index
    %42 = vector.load %arg3[%c8, %c0_27, %c0_28] : memref<9x8x4xbf16, #tpu.memory_space<vmem>>, vector<1x8x4xbf16>
    %43 = vector.shape_cast %42 : vector<1x8x4xbf16> to vector<8x4xbf16>
    %cst_29 = arith.constant dense<0.000000e+00> : vector<8x256xf32>
    %44 = tpu.matmul %43, %41, %cst_29 {dimension_numbers = #tpu.dot_dimension_numbers<[1], [0], [0], [1], [0, 0, 1, 1], [], []>} : vector<8x4xbf16>, vector<4x256xbf16>, vector<8x256xf32> -> vector<8x256xf32>
    %45 = arith.addf %40, %44 : vector<8x256xf32>
    %c0_30 = arith.constant 0 : index
    %c0_31 = arith.constant 0 : index
    %46 = vector.load %arg4[%c0_30, %c0_31] : memref<8x1xf32, #tpu.memory_space<vmem>>, vector<8x1xf32>
    %47 = vector.broadcast %46 : vector<8x1xf32> to vector<8x256xf32>
    %48 = arith.addf %45, %47 : vector<8x256xf32>
    %c0_32 = arith.constant 0 : index
    %c0_33 = arith.constant 0 : index
    %c0_34 = arith.constant 0 : index
    %49 = vector.load %arg5[%c0_32, %c0_33, %c0_34] : memref<1x8x256xf32, #tpu.memory_space<vmem>>, vector<1x8x256xf32>
    %50 = vector.shape_cast %49 : vector<1x8x256xf32> to vector<8x256xf32>
    %51 = vector.shape_cast %48 : vector<8x256xf32> to vector<1x8x256xf32>
    tpu.vector_store %arg5[%c0_32, %c0_33, %c0_34], %51 {strides = array<i32>} : memref<1x8x256xf32, #tpu.memory_space<vmem>>, vector<1x8x256xf32>,
    return
  }
  func.func @transform_0(%arg0: i32, %arg1: i32) -> (i32, i32, i32, i32) {
    %c0_i32 = arith.constant 0 : i32
    %c0_i32_0 = arith.constant 0 : i32
    %c0_i32_1 = arith.constant 0 : i32
    return %arg0, %arg1, %c0_i32, %c0_i32_0 : i32, i32, i32, i32
  }
  func.func @transform_1(%arg0: i32, %arg1: i32) -> (i32, i32, i32) {
    %c0_i32 = arith.constant 0 : i32
    %c0_i32_0 = arith.constant 0 : i32
    %c0_i32_1 = arith.constant 0 : i32
    %c0_i32_2 = arith.constant 0 : i32
    return %c0_i32, %c0_i32_0, %c0_i32_1 : i32, i32, i32
  }
  func.func @transform_2(%arg0: i32, %arg1: i32) -> (i32, i32) {
    %c0_i32 = arith.constant 0 : i32
    %c0_i32_0 = arith.constant 0 : i32
    %c0_i32_1 = arith.constant 0 : i32
    return %c0_i32, %c0_i32_0 : i32, i32
  }
  func.func @transform_3(%arg0: i32, %arg1: i32) -> (i32, i32, i32) {
    %c0_i32 = arith.constant 0 : i32
    %c0_i32_0 = arith.constant 0 : i32
    return %arg0, %c0_i32, %arg1 : i32, i32, i32
  }
}

</mosaic_0001>

<bundles_post_ra>
// kernel: tpu_custom_call.1
= control target key start
LH: loop header
LB: loop body
LE: loop exit
PB: predicated region body
PF: predicated region fallthrough
CT: control target
= control target key end

     0   :  { %8 = vsyncpa [#allocation3], 0  ;;  %s1336_s0 = inlined_call_operand.vmem [shape: bf16[2,2,4,294], index: 0, kind: input, shape index: {}]   ;;  %s1337_s1 = inlined_call_operand.vmem [shape: bf16[9,8,4], index: 1, kind: input, shape index: {}]   ;;  %s1338_s2 = inlined_call_operand.vmem [shape: f32[8,1], index: 2, kind: input, shape index: {}]   ;;  %s1339_s3 = inlined_call_operand.hbm [shape: f32[2,8,512], index: 3, kind: output, shape index: {}]  }
   0x1   :  { %10 = vsyncpa [#allocation3 + $0x1], 0  ;;  %s1132_s12 = smov 0   ;;  %s1134_s13 = smov 0  }
   0x2   :  { %s1136_s14 = smov 0   ;;  %s1138_s15 = smov 0  }
   0x3   :  { %s1140_s16 = smov 0   ;;  %s1142_s17 = smov 0  }
   0x4   :  { %s1144_s18 = smov 0   ;;  %s1146_s19 = smov 0  }
   0x5 LB: > { %s881_s20 = sadd.s32 4294967295, %s1099_s19   ;;  %s882_s21 = sadd.s32 4294967294, %s1099_s19   ;;  %s1099_s19 = sphi %s1146_s19, %s16_s19   ;;  %s1095_s18 = sphi %s1144_s18, %s1348_s18   ;;  %s1091_s17 = sphi %s1142_s17, %s1347_s17   ;;  %s1087_s16 = sphi %s1140_s16, %s1346_s16   ;;  %s1083_s15 = sphi %s1138_s15, %s1345_s15   ;;  %s1079_s14 = sphi %s1136_s14, %s1344_s14   ;;  %s1075_s13 = sphi %s1134_s13, %s1343_s13   ;;  %s1071_s12 = sphi %s1132_s12, %s1342_s12  }
   0x6   : > { %s25_s22 = sadd.s32 1, %s1091_s17  ;;  %s28_s23 = sadd.s32 1, %s1095_s18 }
   0x7   : > { %p26_p0 = scmp.ge.s32.totalorder %s25_s22, 2  ;;  %p117_p1 = scmp.ne.s32.totalorder %s1079_s14, %s1075_s13 }
   0x8   : > { %p118_p2 = scmp.eq.s32.totalorder %s881_s20, 3  ;;  %p123_p5 = scmp.ne.s32.totalorder %s1075_s13, %s1071_s12 }
   0x9   : > { %s1350_s22 = smov (%p26_p0, %s25_s22), 0  ;;  %s1352_s23 = smov (!%p26_p0, %s28_s23), %s1095_s18 }
   0xa   : > { %s103_s24 = ssub.s32 %s1091_s17, %s1350_s22  ;;  %p1183_p3 = por %p118_p2, %p117_p1 }
   0xb   : > { %p30_p4 = scmp.ge.s32.totalorder %s1352_s23, 2  ;;  %p124_p6 = scmp.eq.s32.totalorder %s882_s21, 3 }
   0xc   : > { %p885_p7 = scmp.ge.s32.totalorder %s1099_s19, 1  ;;  %p160_p9 = scmp.lt.s32.totalorder %s1099_s19, 5 }
   0xd   : > { %s1354_s23 = smov (%p30_p4, %s1352_s23), 0  ;;  %p1192_p8 = por %p124_p6, %p123_p5 }
   0xe   : > { %s102_s27 = ssub.s32 %s1095_s18, %s1354_s23  ;;  %s107_s28 = sadd.s32 1, %s1079_s14 }
   0xf   : > { %s104_s29 = sor.u32 %s103_s24, %s102_s27  ;;  %p161_p10 = pnand %p885_p7, %p160_p9 }
  0x10   : > { %p105_p11 = scmp.eq.s32.totalorder %s104_s29, 0  ;;  %p188_p12 = scmp.lt.s32.totalorder (!%p161_p10), %s1087_s16, 1  ;;  %v208_v0 = vlaneseq (!%p161_p10)  ;;  %v1101_v1 = vmov (!%p161_p10), 1983009808   ;;  %vm233_vm0 = vcmask (!%p161_p10), 1041408   ;;  %v1102_v9 = vmov (!%p161_p10), 0  }
  0x11   : > { %164 = sbr.rel (%p161_p10) target bundleno = 430 (0x1ae), region = 32  ;;  %p190_p13 = scmp.lt.s32.totalorder (!%p161_p10), %s1083_s15, 1  ;;  %v206_v2 = vunpack.c.l.s4 (!%p161_p10), %v1101_v1  ;;  %272 = vmatprep.mubr.bf16.mxu0 (!%p161_p10), %v1102_v9  ;;  %322 = vmatprep.mubr.bf16.mxu1 (!%p161_p10), %v1102_v9  ;;  %v200_v13 = vld [vmem:[%s1337_s1] sm:$0xf] (!%p161_p10)  ;;  %vm229_vm1 = vcmask (!%p161_p10), 31744   ;;  %vm226_vm2 = vcmask (!%p161_p10), 1039360  }
  0x12   : > { %s1201_s30 = scalar_select %p105_p11, %s1079_s14, %s107_s28  }
  0x13   : > { %v207_v3 = vunpack.c.0.s8 (!%p161_p10), %v206_v2  ;;  %v209_v4 = vshrl.u32 (!%p161_p10), %v208_v0, 7  ;;  %s1103_s21 = smov (!%p161_p10), 126   ;;  %s1104_s24 = smov (!%p161_p10), 127   ;;  %1003 = vset.pattern.permute.xlu0 (!%p161_p10), %v1102_v9  ;;  %v772_v14 = vld [vmem:[%s1338_s2] sm:$0xff] (!%p161_p10)  ;;  %vm339_vm3 = vcmask (!%p161_p10), 1031168   ;;  %vm402_vm4 = vcmask (!%p161_p10), 900096  }
  0x14   : > { %s1105_s29 = smov (!%p161_p10), 110   ;;  %v888_v24 = vld [vmem:[%s1337_s1 + $0x4] sm:$0xf] (!%p161_p10)  ;;  %vm465_vm5 = vcmask (!%p161_p10), 891904   ;;  %v893_v35 = vld [vmem:[%s1337_s1 + $0x8] sm:$0xf] (!%p161_p10) }
  0x15   : > { %v210_v5 = vsub.s32 (!%p161_p10), %v207_v3, %v209_v4  ;;  %v896_v38 = vld [vmem:[%s1337_s1 + $0xc] sm:$0xf] (!%p161_p10)  ;;  %vm528_vm6 = vcmask (!%p161_p10), 883712   ;;  %v899_v45 = vld [vmem:[%s1337_s1 + $0x10] sm:$0xf] (!%p161_p10)  ;;  %vm591_vm7 = vcmask (!%p161_p10), 752640  }
  0x16   : > { %v902_v50 = vld [vmem:[%s1337_s1 + $0x14] sm:$0xf] (!%p161_p10)  ;;  %v905_v56 = vld [vmem:[%s1337_s1 + $0x18] sm:$0xf] (!%p161_p10)  ;;  %vm654_vm8 = vcmask (!%p161_p10), 744448   ;;  %vm717_vm9 = vcmask (!%p161_p10), 736256  }
  0x17   : > { %v908_v0 = vld [vmem:[%s1337_s1 + $0x1c] sm:$0xf] (!%p161_p10)  ;;  %s915_s27 = sshll.u32 (!%p161_p10), %s1083_s15, 1  ;;  %s916_s28 = sshll.u32 (!%p161_p10), %s1087_s16, 2 }
  0x18   : > { %s189_s4 = scalar_select %p188_p12, %s1087_s16, 1 }
  0x19   : > { %s191_s5 = scalar_select %p190_p13, %s1083_s15, 1 }
  0x1a   : > { %s921_s6 = smul.u32 6, %s189_s4  ;;  %s1106_s4 = smov 109  }
  0x1b   : > { %s920_s7 = smul.u32 3, %s191_s5  ;;  %s1107_s5 = smov 108  }
  0x1c   : > { %s1111_s10 = smov [#allocation2]  }
  0x1d   : > { %s194_s8 = sadd.s32 %s921_s6, %s920_s7  ;;  %s1108_s6 = smov 92  }
  0x1e   : > { %s887_s9 = sshll.u32 %s194_s8, 1  ;;  %s1109_s7 = smov 91  }
  0x1f   : > { %s196_s20 = scalar_lea.vmem %s1336_s0, %s887_s9  ;;  %s1110_s8 = smov 90  }
  0x20   : > { %v199_v6 = vld [vmem:[%s196_s20] sm:$0x3f]  ;;  %s1009_s11 = sshll.u32 %s1111_s10, 4  ;;  %s1010_s11 = int_to_ptr.vmem [resolvable:$false] %s1009_s11 }
  0x21   : > { %v211_v7 = vrot.slane %v199_v6, %v210_v5  ;;  %v204_v8 = vcombine.high %v199_v6, %v199_v6  ;;  %v911_v6 = vld [vmem:[%s1337_s1 + $0x20] sm:$0xf]  ;;  %s1011_s20 = scalar_lea.vmem %s1010_s11, 512 }
  0x23   : > { %333 = vrot.lane.b32.xlu1 %v211_v7, %s1103_s21  ;;  %220 = vrot.lane.b32.xlu0 %v211_v7, %s1104_s24  ;;  %v218_v10 = vrot.slane %v204_v8, %v210_v5  ;;  %v219_v11 = vcombine.high %v211_v7, %v211_v7  ;;  %v285_v12 = vsel %vm233_vm0, %v211_v7, 0 }
  0x25   : > { %891 = vmatprep.subr.msk.bf16.mxu1 %vm233_vm0, %v219_v11 }
  0x26   : > { %291 = vmatpush1.bf16.msra.mxu1 %v285_v12 }
  0x27   : > { %396 = vrot.lane.b32.xlu0 %v211_v7, %s1105_s29  ;;  %224 = vrot.lane.b32.xlu1 %v218_v10, %s1104_s24 }
  0x29   : > { %892 = vmatmul.mubr.msk.bf16.vlgmr.msra.gmra.mrb[0].mxu1 %vm229_vm1, %v200_v13 }
  0x2a   : > { %446 = vmatprep.mubr.bf16.mxu1 %v1102_v9 }
  0x2b   : > { %222 = vrot.lane.b32.xlu0 %v219_v11, %s1104_s24  ;;  %337 = vrot.lane.b32.xlu1 %v218_v10, %s1103_s21 }
  0x2f   : > { %335 = vrot.lane.b32.xlu0 %v219_v11, %s1103_s21  ;;  %398 = vrot.lane.b32.xlu1 %v219_v11, %s1105_s29  ;;  %s185_s21 = sand.u32 1, %s1075_s13  }
  0x30   : > { %s886_s24 = sshll.u32 %s185_s21, 4 }
  0x33   : > { %400 = vrot.lane.b32.xlu0 %v218_v10, %s1105_s29  ;;  %459 = vrot.lane.b32.xlu1 %v211_v7, %s1106_s4  ;;  %s795_s29 = sadd.s32 %s916_s28, %s915_s27 }
  0x37   : > { %461 = vrot.lane.b32.xlu0 %v219_v11, %s1106_s4  ;;  %463 = vrot.lane.b32.xlu1 %v218_v10, %s1106_s4  ;;  %s917_s4 = sshll.u32 %s795_s29, 7 }
  0x3b   : > { %522 = vrot.lane.b32.xlu0 %v211_v7, %s1107_s5  ;;  %524 = vrot.lane.b32.xlu1 %v219_v11, %s1107_s5 }
  0x3f   : > { %526 = vrot.lane.b32.xlu0 %v218_v10, %s1107_s5  ;;  %585 = vrot.lane.b32.xlu1 %v211_v7, %s1108_s6  ;;  %s187_s5 = scalar_lea.vmem [#allocation2], %s886_s24 }
  0x43   : > { %587 = vrot.lane.b32.xlu0 %v219_v11, %s1108_s6  ;;  %589 = vrot.lane.b32.xlu1 %v218_v10, %s1108_s6  ;;  %s799_s6 = sshll.u32 %s187_s5, 4  ;;  %s1285_s6 = int_to_ptr.vmem [resolvable:$true] %s799_s6 }
  0x44   : > { %s1005_s9 = scalar_lea.vmem %s1285_s6, 256  ;;  %p1012_p4 = scmp.lt.s32.totalorder %s1285_s6, %s1010_s11 }
  0x45   : > { %p1006_p0 = scmp.ne.s32.totalorder %s1285_s6, %s1005_s9  ;;  %p1013_p5 = scmp.lt.s32.totalorder %s1011_s20, %s1005_s9 }
  0x47   : > { %648 = vrot.lane.b32.xlu0 %v211_v7, %s1109_s7  ;;  %650 = vrot.lane.b32.xlu1 %v219_v11, %s1109_s7  ;;  %p1007_p1 = pnand %p1006_p0, %p1183_p3  ;;  %p1014_p6 = por %p1013_p5, %p1012_p4 }
  0x49   : > { %p1008_p2 = pneg %p1007_p1 }
  0x4b   : > { %652 = vrot.lane.b32.xlu0 %v218_v10, %s1109_s7  ;;  %711 = vrot.lane.b32.xlu1 %v211_v7, %s1110_s8  ;;  %s1283_s7 = scalar_lea.hbm %s1339_s3, %s917_s4  ;;  %p1015_p7 = pnand %p1014_p6, %p1008_p2 }
  0x4f   : > { %713 = vrot.lane.b32.xlu0 %v219_v11, %s1110_s8  ;;  %715 = vrot.lane.b32.xlu1 %v218_v10, %s1110_s8  ;;  %s783_s8 = scalar_lea.sflag [#allocation3], %s185_s21 }
  0x53   : > { %775 = vperm.xlu0 %1003, %v772_v14  }
  0x95   : > { %v334_v15 = vpop.permute.xlu1 %333  ;;  %v221_v16 = vpop.permute.xlu0 %220 }
  0x99   : > { %v397_v17 = vpop.permute.xlu0 %396  ;;  %v225_v18 = vpop.permute.xlu1 %224 }
  0x9d   : > { %v223_v19 = vpop.permute.xlu0 %222  ;;  %v338_v20 = vpop.permute.xlu1 %337 }
  0x9e   : > { %v228_v21 = vsel %vm226_vm2, %v223_v19, %v225_v18  ;;  %v227_v22 = vsel %vm226_vm2, %v221_v16, %v223_v19 }
  0x9f   : > { %889 = vmatprep.subr.msk.bf16.mxu0 %vm233_vm0, %v228_v21  ;;  %v235_v23 = vsel %vm233_vm0, %v227_v22, 0 }
  0xa0   : > { %241 = vmatpush1.bf16.msra.mxu0 %v235_v23 }
  0xa1   : > { %v336_v25 = vpop.permute.xlu0 %335  ;;  %v399_v26 = vpop.permute.xlu1 %398 }
  0xa2   : > { %v340_v27 = vsel %vm339_vm3, %v334_v15, %v336_v25  ;;  %v341_v28 = vsel %vm339_vm3, %v336_v25, %v338_v20  ;;  %v403_v30 = vsel %vm402_vm4, %v397_v17, %v399_v26 }
  0xa3   : > { %v346_v29 = vsel %vm233_vm0, %v340_v27, 0  ;;  %890 = vmatmul.mubr.msk.bf16.vlgmr.msra.gmra.mrb[0].mxu0 %vm229_vm1, %v888_v24  ;;  %894 = vmatprep.subr.msk.bf16.mxu0 %vm233_vm0, %v341_v28  ;;  %v409_v34 = vsel %vm233_vm0, %v403_v30, 0 }
  0xa4   : > { %352 = vmatpush1.bf16.msra.mxu0 %v346_v29  ;;  %383 = vmatprep.mubr.bf16.mxu0 %v1102_v9 }
  0xa5   : > { %v401_v31 = vpop.permute.xlu0 %400  ;;  %v460_v32 = vpop.permute.xlu1 %459 }
  0xa6   : > { %v404_v33 = vsel %vm402_vm4, %v399_v26, %v401_v31 }
  0xa7   : > { %897 = vmatprep.subr.msk.bf16.mxu1 %vm233_vm0, %v404_v33 }
  0xa8   : > { %415 = vmatpush1.bf16.msra.mxu1 %v409_v34 }
  0xa9   : > { %v462_v36 = vpop.permute.xlu0 %461  ;;  %v464_v37 = vpop.permute.xlu1 %463 }
  0xaa   : > { %v466_v39 = vsel %vm465_vm5, %v460_v32, %v462_v36  ;;  %v467_v40 = vsel %vm465_vm5, %v462_v36, %v464_v37 }
  0xab   : > { %v472_v41 = vsel %vm233_vm0, %v466_v39, 0  ;;  %895 = vmatmul.mubr.msk.bf16.vlgmr.msra.gmra.mrb[4].mxu0 %vm229_vm1, %v893_v35  ;;  %900 = vmatprep.subr.msk.bf16.mxu0 %vm233_vm0, %v467_v40 }
  0xac   : > { %478 = vmatpush1.bf16.msra.mxu0 %v472_v41  ;;  %898 = vmatmul.mubr.msk.bf16.vlgmr.msra.gmra.mrb[4].mxu1 %vm229_vm1, %v896_v38 }
  0xad   : > { %v523_v42 = vpop.permute.xlu0 %522  ;;  %v525_v43 = vpop.permute.xlu1 %524  ;;  %509 = vmatprep.mubr.bf16.mxu0 %v1102_v9  ;;  %572 = vmatprep.mubr.bf16.mxu1 %v1102_v9 }
  0xae   : > { %v529_v44 = vsel %vm528_vm6, %v523_v42, %v525_v43 }
  0xaf   : > { %v535_v49 = vsel %vm233_vm0, %v529_v44, 0 }
  0xb1   : > { %v527_v46 = vpop.permute.xlu0 %526  ;;  %v586_v47 = vpop.permute.xlu1 %585 }
  0xb2   : > { %v530_v48 = vsel %vm528_vm6, %v525_v43, %v527_v46 }
  0xb3   : > { %901 = vmatmul.mubr.msk.bf16.vlgmr.msra.gmra.mrb[8].mxu0 %vm229_vm1, %v899_v45  ;;  %903 = vmatprep.subr.msk.bf16.mxu1 %vm233_vm0, %v530_v48 }
  0xb4   : > { %541 = vmatpush1.bf16.msra.mxu1 %v535_v49  ;;  %635 = vmatprep.mubr.bf16.mxu0 %v1102_v9 }
  0xb5   : > { %v588_v51 = vpop.permute.xlu0 %587  ;;  %v590_v52 = vpop.permute.xlu1 %589 }
  0xb6   : > { %v592_v53 = vsel %vm591_vm7, %v586_v47, %v588_v51  ;;  %v593_v54 = vsel %vm591_vm7, %v588_v51, %v590_v52 }
  0xb7   : > { %v598_v55 = vsel %vm233_vm0, %v592_v53, 0  ;;  %904 = vmatmul.mubr.msk.bf16.vlgmr.msra.gmra.mrb[8].mxu1 %vm229_vm1, %v902_v50  ;;  %906 = vmatprep.subr.msk.bf16.mxu0 %vm233_vm0, %v593_v54 }
  0xb8   : > { %604 = vmatpush1.bf16.msra.mxu0 %v598_v55  ;;  %698 = vmatprep.mubr.bf16.mxu1 %v1102_v9 }
  0xb9   : > { %v649_v57 = vpop.permute.xlu0 %648  ;;  %v651_v58 = vpop.permute.xlu1 %650 }
  0xba   : > { %v655_v59 = vsel %vm654_vm8, %v649_v57, %v651_v58 }
  0xbb   : > { %907 = vmatmul.mubr.msk.bf16.vlgmr.msra.gmra.mrb[12].mxu0 %vm229_vm1, %v905_v56  ;;  %v661_v63 = vsel %vm233_vm0, %v655_v59, 0 }
  0xbc   : > { %761 = vmatprep.mubr.bf16.mxu0 %v1102_v9 }
  0xbd   : > { %v653_v60 = vpop.permute.xlu0 %652  ;;  %v712_v61 = vpop.permute.xlu1 %711 }
  0xbe   : > { %v656_v62 = vsel %vm654_vm8, %v651_v58, %v653_v60 }
  0xbf   : > { %909 = vmatprep.subr.msk.bf16.mxu1 %vm233_vm0, %v656_v62 }
  0xc0   : > { %667 = vmatpush1.bf16.msra.mxu1 %v661_v63 }
  0xc1   : > { %v714_v1 = vpop.permute.xlu0 %713  ;;  %v716_v2 = vpop.permute.xlu1 %715 }
  0xc2   : > { %v718_v3 = vsel %vm717_vm9, %v712_v61, %v714_v1  ;;  %v719_v4 = vsel %vm717_vm9, %v714_v1, %v716_v2 }
  0xc3   : > { %v724_v5 = vsel %vm233_vm0, %v718_v3, 0  ;;  %910 = vmatmul.mubr.msk.bf16.vlgmr.msra.gmra.mrb[12].mxu1 %vm229_vm1, %v908_v0  ;;  %912 = vmatprep.subr.msk.bf16.mxu0 %vm233_vm0, %v719_v4 }
  0xc4   : > { %730 = vmatpush1.bf16.msra.mxu0 %v724_v5 }
  0xc7   : > { %913 = vmatmul.mubr.msk.bf16.vlgmr.msra.gmra.mrb[16].mxu0 %vm229_vm1, %v911_v6 }
  0xd2   : > { %v776_v54 = vpop.permute.xlu0 %775 }
  0xfc   : > { %v324_v7 = vpop.f32.mrb[0].mxu1 }
  0xfd   : > { %v326_v8 = vpop.f32.mrb[1].mxu1 }
  0xfe   : > { %v328_v9 = vpop.f32.mrb[2].mxu1 }
  0xff   : > { %v329_v10 = vpop.f32.mrb[3].mxu1 }
 0x176   : > { %v274_v11 = vpop.f32.mrb[0].mxu0 }
 0x177   : > { %v276_v12 = vpop.f32.mrb[1].mxu0  ;;  %v325_v13 = vadd.f32 %v324_v7, %v274_v11 }
 0x178   : > { %v278_v14 = vpop.f32.mrb[2].mxu0  ;;  %v327_v15 = vadd.f32 %v326_v8, %v276_v12 }
 0x179   : > { %v279_v16 = vpop.f32.mrb[3].mxu0 }
 0x17e   : > { %v385_v17 = vpop.f32.mrb[4].mxu0 }
 0x17f   : > { %v392_v18 = vadd.f32 %v385_v17, %v325_v13  ;;  %v387_v19 = vpop.f32.mrb[5].mxu0  ;;  %v448_v20 = vpop.f32.mrb[4].mxu1 }
 0x180   : > { %v393_v21 = vadd.f32 %v387_v19, %v327_v15  ;;  %v450_v22 = vpop.f32.mrb[5].mxu1  ;;  %v389_v23 = vpop.f32.mrb[6].mxu0 }
 0x181   : > { %v455_v24 = vadd.f32 %v448_v20, %v392_v18  ;;  %v390_v25 = vpop.f32.mrb[7].mxu0  ;;  %v452_v26 = vpop.f32.mrb[6].mxu1 }
 0x182   : > { %v456_v27 = vadd.f32 %v450_v22, %v393_v21  ;;  %v453_v28 = vpop.f32.mrb[7].mxu1 }
 0x186   : > { %v511_v29 = vpop.f32.mrb[8].mxu0 }
 0x187   : > { %v518_v30 = vadd.f32 %v511_v29, %v455_v24  ;;  %v513_v31 = vpop.f32.mrb[9].mxu0 }
 0x188   : > { %v519_v32 = vadd.f32 %v513_v31, %v456_v27  ;;  %v515_v33 = vpop.f32.mrb[10].mxu0 }
 0x189   : > { %v516_v34 = vpop.f32.mrb[11].mxu0 }
 0x18a   : > { %v574_v35 = vpop.f32.mrb[8].mxu1 }
 0x18b   : > { %v581_v36 = vadd.f32 %v574_v35, %v518_v30  ;;  %v576_v37 = vpop.f32.mrb[9].mxu1 }
 0x18c   : > { %v582_v38 = vadd.f32 %v576_v37, %v519_v32  ;;  %v578_v39 = vpop.f32.mrb[10].mxu1 }
 0x18d   : > { %v579_v40 = vpop.f32.mrb[11].mxu1 }
 0x18e   : > { %v637_v41 = vpop.f32.mrb[12].mxu0 }
 0x18f   : > { %v644_v42 = vadd.f32 %v637_v41, %v581_v36  ;;  %v639_v43 = vpop.f32.mrb[13].mxu0 }
 0x190   : > { %v645_v44 = vadd.f32 %v639_v43, %v582_v38  ;;  %v641_v45 = vpop.f32.mrb[14].mxu0 }
 0x191   : > { %v642_v46 = vpop.f32.mrb[15].mxu0 }
 0x196   : > { %v700_v47 = vpop.f32.mrb[12].mxu1 }
 0x197   : > { %v707_v48 = vadd.f32 %v700_v47, %v644_v42  ;;  %v702_v49 = vpop.f32.mrb[13].mxu1 }
 0x198   : > { %v708_v50 = vadd.f32 %v702_v49, %v645_v44  ;;  %v704_v51 = vpop.f32.mrb[14].mxu1 }
 0x199   : > { %v705_v52 = vpop.f32.mrb[15].mxu1 }
 0x19a   : > { %v763_v53 = vpop.f32.mrb[16].mxu0 }
 0x19b   : > { %v770_v55 = vadd.f32 %v763_v53, %v707_v48  ;;  %v765_v56 = vpop.f32.mrb[17].mxu0 }
 0x19c   : > { %v771_v57 = vadd.f32 %v765_v56, %v708_v50  ;;  %v767_v58 = vpop.f32.mrb[18].mxu0 }
 0x19d   : > { %v778_v59 = vadd.f32 %v776_v54, %v770_v55  ;;  %v768_v60 = vpop.f32.mrb[19].mxu0 }
 0x19e   : > { %v779_v61 = vadd.f32 %v776_v54, %v771_v57 }
 0x19f   : > { %780 = vst [vmem:[%s187_s5] sm:$0xff] %v778_v59 }
 0x1a0   : > { %781 = vst [vmem:[%s187_s5 + $0x8] sm:$0xff] %v779_v61 }
 0x1a1   : > { %1018 = shalt.err (!%p1015_p7)
}
 0x1a2   : > { %s1019_s21 = scalar_lea.hbm %s1283_s7, 256  ;;  %s1023_s28 = scalar_lea.hbm %s1339_s3, 1024 }
 0x1a3   : > { %p1020_p9 = scmp.ne.s32.totalorder %s1283_s7, %s1019_s21  ;;  %p1024_p12 = scmp.lt.u32.totalorder %s1283_s7, %s1339_s3 }
 0x1a4   : > { %p1025_p13 = scmp.lt.u32.totalorder %s1023_s28, %s1019_s21  ;;  %p1027_p1 = scmp.lt.u32.totalorder %s1019_s21, %s1283_s7 }
 0x1a5   : > { %p1021_p10 = pnand %p1020_p9, %p1183_p3 }
 0x1a6   : > { %p1026_p0 = por %p1025_p13, %p1024_p12 }
 0x1a7   : > { %p1022_p11 = pneg %p1021_p10 }
 0x1a8   : > { %p1028_p2 = por %p1027_p1, %p1026_p0 }
 0x1aa   : > { %p1029_p4 = pnand %p1028_p2, %p1022_p11 }
 0x1ac   : > { %1032 = shalt.err (!%p1029_p4)
}
 0x1ad   : > { %922 = dma.vmem_to_hbm [thread:$0]  (%p1183_p3), %s1285_s6, 256, %s1283_s7, %s783_s8  }
 0x1ae PF: > { %p928_p5 = scmp.ge.s32.totalorder %s1099_s19, 2  ;;  %s811_s5 = sand.u32 1, %s1071_s12  }
 0x1af   : > { %s812_s15 = scalar_lea.sflag [#allocation3], %s811_s5 }
 0x1b0   : > { %p925_p6 = pnand %p928_p5, %p1192_p8 }
 0x1b2   : > { %1066 = dma.done.wait (!%p925_p6), %s812_s15, 256  }
 0x1b3   : > { %1068 = vsyncadd (!%p925_p6), %s812_s15, 4294967040  ;;  %s16_s19 = sadd.s32 1, %s1099_s19   ;;  %s1342_s12 = smov %s1075_s13 }
 0x1b4   : > { %p13_p7 = scmp.ge.s32.totalorder %s16_s19, 6   ;;  %s1343_s13 = smov %s1079_s14 }
 0x1b5   : > { %s1344_s14 = smov %s1201_s30  ;;  %s1345_s15 = smov %s1091_s17 }
 0x1b6   : > { %s1346_s16 = smov %s1095_s18  ;;  %s1347_s17 = smov %s1350_s22 }
 0x1b7   : > { %s1348_s18 = smov %s1354_s23  ;;  %15 = sbr.rel (!%p13_p7) target bundleno = 5 (0x5), region = 75 }
 0x1be   :  { %817 = vsyncpa [#allocation3], 1 }
 0x1bf   :  { %819 = vsyncpa [#allocation3 + $0x1], 1 }

</bundles_post_ra>
